<compile_context>
chip_gen: v7x
topology: tpu7x:2x2x1
jax: 0.10.0
libtpu: 0.0.40
codegen_flags: <defaults>
</compile_context>

<pallas_src>
import math

import jax
import jax.numpy as jnp
from jax.experimental import pallas as pl
from jax.experimental.pallas import tpu as pltpu


# ----------------------------- Pallas kernel --------------------------------
def _upsample_kernel(x_ref, w_ref, b_ref, o_ref):
    """One grid step = (batch n, image-row block hb).

    x_ref: (RH, W, C)        activation tile, caller dtype (cast in VMEM)
    w_ref: (2, C, 2C) bf16   w_ref[i, cin, j*C + c] = weight of out-chan 4c+2i+j
    b_ref: (2, 1, 2C) f32    bias in the same column order
    o_ref: (RH, 2, W, 2C)    bf16 slab of the (N, H, 2, W, 2C) output buffer
    """
    rh, w, c = x_ref.shape
    # Cast to the matmul dtype in VMEM (no separate HBM cast pass for f32
    # callers).  The (RH, W, C) -> (RH*W, C) merge is layout-free whenever
    # W % 8 == 0 (sublane aligned), which holds for all production shapes.
    x = x_ref[...].astype(w_ref.dtype).reshape(rh * w, c)
    for i in range(2):                          # static unroll: 2 row-subpixels
        # 1x1 conv == channel matmul on the MXU; bf16 inputs, f32 accumulation.
        y = jnp.dot(x, w_ref[i], preferred_element_type=jnp.float32)
        y = y + b_ref[i]                        # f32 bias
        y = y * jax.nn.sigmoid(y)               # SiLU, f32 epilogue
        o_ref[:, i, :, :] = y.astype(o_ref.dtype).reshape(rh, w, 2 * c)


# ----------------------------- Sizing helpers --------------------------------
def _vmem_config():
    """(block budget, vmem_limit_bytes) per TPU generation.

    v5e/v6e: 128 MiB VMEM per TensorCore; v7x: 64 MiB.  Headroom is left for
    the VMEM-resident weight/bias and Mosaic internal scratch."""
    try:
        cap = pltpu.get_tpu_info().vmem_capacity_bytes
    except Exception:                       # conservative fallback (v7x-sized)
        cap = 64 * 1024 * 1024
    if cap <= 64 * 1024 * 1024:             # v7x
        return 20 * 1024 * 1024, 40 * 1024 * 1024
    return 72 * 1024 * 1024, 96 * 1024 * 1024   # v5e / v6e


def _pick_row_block(N, H, W, C, *, x_bytes, out_bytes, budget_bytes):
    """Input-image rows per grid step, sized to a VMEM budget.

    Per input row the kernel needs roughly:
      * double-buffered input tile              2 * W*C      * x_bytes
      * double-buffered output tile (4x elems)  2 * 4*W*C    * out_bytes
      * in-kernel temporaries: bf16 x copy + ~2 live f32 copies of the
        (RH*W, 2C) matmul/SiLU value            (2 + 16) * W*C
    """
    per_row = W * C * (2 * x_bytes + 8 * out_bytes + 18)
    rh = max(1, int(budget_bytes // per_row))
    rh = min(H, rh)
    # v7x megacore: keep at least 2 parallel grid steps so both TCs get work.
    if N == 1 and rh >= H and H >= 2:
        rh = (H + 1) // 2
    if rh > 8:
        rh -= rh % 8                        # sublane-aligned tiles
    return rh


# --------------------------------- Wrapper ------------------------------------
def upsample_nhwc(x_nhwc, w_k, b_k, *, out_dtype=jnp.bfloat16):
    """Fused conv1x1 + SiLU + PixelShuffle(2) on NHWC input.

    x_nhwc: (N, H, W, C) any float dtype (cast to bf16 inside the kernel);
    w_k: (2, C, 2C) bf16;  b_k: (2, 1, 2C) f32.
    Returns the upsampled NHWC tensor (N, 2H, 2W, C) in `out_dtype`
    (bf16 default: the op is HBM-write bound, f32 output ~doubles traffic).
    """
    N, H, W, C = x_nhwc.shape
    assert w_k.shape == (2, C, 2 * C) and b_k.shape == (2, 1, 2 * C)

    budget, vmem_limit = _vmem_config()
    rh = _pick_row_block(N, H, W, C,
                         x_bytes=x_nhwc.dtype.itemsize,
                         out_bytes=jnp.dtype(out_dtype).itemsize,
                         budget_bytes=budget)
    n_hb = pl.cdiv(H, rh)

    out = pl.pallas_call(
        _upsample_kernel,
        out_shape=jax.ShapeDtypeStruct((N, H, 2, W, 2 * C), out_dtype),
        grid_spec=pltpu.PrefetchScalarGridSpec(
            num_scalar_prefetch=0,
            grid=(N, n_hb),
            in_specs=[
                pl.BlockSpec((pl.Squeezed(), rh, W, C),
                             lambda n, hb: (n, hb, 0, 0)),
                # Weight / bias: tiny, whole array resident in VMEM.
                pl.BlockSpec(memory_space=pltpu.MemorySpace.VMEM),
                pl.BlockSpec(memory_space=pltpu.MemorySpace.VMEM),
            ],
            out_specs=pl.BlockSpec((pl.Squeezed(), rh, 2, W, 2 * C),
                                   lambda n, hb: (n, hb, 0, 0, 0)),
        ),
        compiler_params=pltpu.CompilerParams(
            # Both grid axes are independent -> shards over v7x's 2 TCs.
            dimension_semantics=("parallel", "parallel"),
            vmem_limit_bytes=vmem_limit,
        ),
    )(x_nhwc, w_k, b_k)

    # (N, H, 2, W, 2C) and (N, 2H, 2W, C) share the same row-major memory
    # layout, so this reshape is metadata-only (zero HBM traffic).
    return out.reshape(N, 2 * H, 2 * W, C)


# ------------------------------ Params ---------------------------------------
def init_upsample_params(key, dim, dtype=jnp.float32):
    """Mirror Upsample.init_conv_ (PyTorch layout): kaiming_uniform on
    (dim, dim, 1, 1), repeat 'o ... -> (o 4) ...', zero bias.
    Returns PyTorch-layout (w_full (4*dim, dim), b_full (4*dim,))."""
    fan_in = dim * 1 * 1
    bound = math.sqrt(6.0 / fan_in)            # kaiming_uniform_, default gain
    w_base = jax.random.uniform(key, (dim, dim), dtype=dtype,
                                minval=-bound, maxval=bound)   # (o, i)
    w_full = jnp.repeat(w_base, 4, axis=0)     # weight[4*c + s] = w_base[c]
    b_full = jnp.zeros((4 * dim,), dtype=dtype)
    return w_full, b_full


def prepare_upsample_params(w_full, b_full, *, compute_dtype=jnp.bfloat16):
    """One-time repack of PyTorch-layout params into kernel layout (hoisted out
    of the per-call path).  Conv output channel o = 4*c + 2*i + j is mapped to
    kernel column [i][j*C + c]; weight is pre-transposed to (Cin, ...)."""
    c_out, c_in = w_full.shape
    C = c_out // 4
    w_k = w_full.reshape(C, 2, 2, c_in)                      # [c, i, j, cin]
    w_k = jnp.transpose(w_k, (1, 3, 2, 0))                   # [i, cin, j, c]
    w_k = w_k.reshape(2, c_in, 2 * C).astype(compute_dtype)  # bf16 MXU input
    b_k = b_full.reshape(C, 2, 2)                            # [c, i, j]
    b_k = jnp.transpose(b_k, (1, 2, 0))                      # [i, j, c]
    b_k = b_k.reshape(2, 1, 2 * C).astype(jnp.float32)       # f32 epilogue
    return w_k, b_k


# ------------------------------ Module wrapper --------------------------------
def upsample_forward(x_nchw, w_k, b_k):
    """(N, C, H, W) -> (N, C, 2H, 2W) (bf16), matching the PyTorch module API.

    The NCHW<->NHWC transposes exist only for interface parity; an NHWC
    end-to-end model should call `upsample_nhwc` directly and both disappear.
    """
    y = upsample_nhwc(jnp.transpose(x_nchw, (0, 2, 3, 1)), w_k, b_k)
    return jnp.transpose(y, (0, 3, 1, 2))


# ---------------------------------- Main --------------------------------------
if __name__ == "__main__":
    key = jax.random.PRNGKey(0)
    k_w, k_x = jax.random.split(key)

    N, C, H, W = 2, 4, 16, 16
    w_full, b_full = init_upsample_params(k_w, C)          # PyTorch layout, f32
    w_k, b_k = prepare_upsample_params(w_full, b_full)     # kernel layout
    x = jax.random.normal(k_x, (N, C, H, W), dtype=jnp.float32)

    out = jax.block_until_ready(upsample_forward(x, w_k, b_k))

    # Reference: identical math with the same bf16-quantized matmul inputs and
    # bf16-quantized output (the kernel accumulates / applies SiLU in f32).
    xq = x.astype(jnp.bfloat16).astype(jnp.float32)
    wq = w_full.astype(jnp.bfloat16).astype(jnp.float32)
    y_ref = jnp.einsum("nchw,oc->nohw", xq, wq) + b_full[None, :, None, None]
    y_ref = y_ref * jax.nn.sigmoid(y_ref)
    y_ref = y_ref.reshape(N, C, 2, 2, H, W)
    y_ref = jnp.transpose(y_ref, (0, 1, 4, 2, 5, 3)).reshape(N, C, 2 * H, 2 * W)
    y_ref = y_ref.astype(jnp.bfloat16).astype(jnp.float32)

    assert out.shape == (N, C, 2 * H, 2 * W)
    assert out.dtype == jnp.bfloat16
    out_f32 = out.astype(jnp.float32)
    assert jnp.allclose(out_f32, y_ref, atol=1e-2, rtol=1e-2), \
        float(jnp.max(jnp.abs(out_f32 - y_ref)))
    print("KERNEL_OK")
</pallas_src>

<mosaic_0001>
module attributes {stable_mosaic.version = 11 : i64} {
  func.func @_upsample_kernel(%arg0: i32, %arg1: i32, %arg2: memref<1x16x16x4xf32, #tpu.memory_space<vmem>>, %arg3: memref<2x4x8xbf16, #tpu.memory_space<vmem>>, %arg4: memref<2x1x8xf32, #tpu.memory_space<vmem>>, %arg5: memref<1x16x2x16x8xbf16, #tpu.memory_space<vmem>>) attributes {dimension_semantics = [#tpu.dimension_semantics<parallel>, #tpu.dimension_semantics<parallel>], iteration_bounds = array<i64: 2, 1>, scalar_prefetch = 0 : i64, scratch_operands = 0 : i64, tpu.core_type = #tpu.core_type<tc>, window_params = [{transform_indices = @transform_0, window_bounds = array<i64: 1, 16, 16, 4>}, {pipeline_mode = #tpu.pipeline_mode<synchronous>, transform_indices = @transform_1, window_bounds = array<i64: 2, 4, 8>}, {pipeline_mode = #tpu.pipeline_mode<synchronous>, transform_indices = @transform_2, window_bounds = array<i64: 2, 1, 8>}, {transform_indices = @transform_3, window_bounds = array<i64: 1, 16, 2, 16, 8>}]} {
    %c0 = arith.constant 0 : index
    %c0_0 = arith.constant 0 : index
    %c0_1 = arith.constant 0 : index
    %c0_2 = arith.constant 0 : index
    %0 = vector.load %arg2[%c0, %c0_0, %c0_1, %c0_2] : memref<1x16x16x4xf32, #tpu.memory_space<vmem>>, vector<1x16x16x4xf32>
    %1 = vector.shape_cast %0 : vector<1x16x16x4xf32> to vector<16x16x4xf32>
    %2 = arith.truncf %1 : vector<16x16x4xf32> to vector<16x16x4xbf16>
    %3 = vector.shape_cast %2 : vector<16x16x4xbf16> to vector<256x4xbf16>
    %c0_3 = arith.constant 0 : index
    %c0_4 = arith.constant 0 : index
    %c0_5 = arith.constant 0 : index
    %4 = vector.load %arg3[%c0_3, %c0_4, %c0_5] : memref<2x4x8xbf16, #tpu.memory_space<vmem>>, vector<1x4x8xbf16>
    %5 = vector.shape_cast %4 : vector<1x4x8xbf16> to vector<4x8xbf16>
    %cst = arith.constant dense<0.000000e+00> : vector<256x8xf32>
    %6 = tpu.matmul %3, %5, %cst {dimension_numbers = #tpu.dot_dimension_numbers<[1], [0], [0], [1], [0, 0, 1, 1], [], []>} : vector<256x4xbf16>, vector<4x8xbf16>, vector<256x8xf32> -> vector<256x8xf32>
    %c0_6 = arith.constant 0 : index
    %c0_7 = arith.constant 0 : index
    %c0_8 = arith.constant 0 : index
    %7 = vector.load %arg4[%c0_6, %c0_7, %c0_8] : memref<2x1x8xf32, #tpu.memory_space<vmem>>, vector<1x1x8xf32>
    %8 = vector.shape_cast %7 : vector<1x1x8xf32> to vector<1x8xf32>
    %9 = vector.broadcast %8 : vector<1x8xf32> to vector<256x8xf32>
    %10 = arith.addf %6, %9 : vector<256x8xf32>
    %11 = arith.negf %10 : vector<256x8xf32>
    %12 = math.exp %11 : vector<256x8xf32>
    %cst_9 = arith.constant 1.000000e+00 : f32
    %13 = vector.broadcast %cst_9 : f32 to vector<256x8xf32>
    %14 = arith.addf %13, %12 : vector<256x8xf32>
    %15 = arith.divf %13, %14 : vector<256x8xf32>
    %16 = arith.mulf %10, %15 : vector<256x8xf32>
    %17 = arith.truncf %16 : vector<256x8xf32> to vector<256x8xbf16>
    %18 = vector.shape_cast %17 : vector<256x8xbf16> to vector<16x16x8xbf16>
    %c0_10 = arith.constant 0 : index
    %c0_11 = arith.constant 0 : index
    %c0_12 = arith.constant 0 : index
    %c0_13 = arith.constant 0 : index
    %c0_14 = arith.constant 0 : index
    %19 = vector.load %arg5[%c0_10, %c0_11, %c0_12, %c0_13, %c0_14] : memref<1x16x2x16x8xbf16, #tpu.memory_space<vmem>>, vector<1x16x1x16x8xbf16>
    %20 = vector.shape_cast %19 : vector<1x16x1x16x8xbf16> to vector<16x16x8xbf16>
    %21 = vector.shape_cast %18 : vector<16x16x8xbf16> to vector<1x16x1x16x8xbf16>
    tpu.vector_store %arg5[%c0_10, %c0_11, %c0_12, %c0_13, %c0_14], %21 {strides = array<i32>} : memref<1x16x2x16x8xbf16, #tpu.memory_space<vmem>>, vector<1x16x1x16x8xbf16>,
    %c1 = arith.constant 1 : index
    %c0_15 = arith.constant 0 : index
    %c0_16 = arith.constant 0 : index
    %22 = vector.load %arg3[%c1, %c0_15, %c0_16] : memref<2x4x8xbf16, #tpu.memory_space<vmem>>, vector<1x4x8xbf16>
    %23 = vector.shape_cast %22 : vector<1x4x8xbf16> to vector<4x8xbf16>
    %cst_17 = arith.constant dense<0.000000e+00> : vector<256x8xf32>
    %24 = tpu.matmul %3, %23, %cst_17 {dimension_numbers = #tpu.dot_dimension_numbers<[1], [0], [0], [1], [0, 0, 1, 1], [], []>} : vector<256x4xbf16>, vector<4x8xbf16>, vector<256x8xf32> -> vector<256x8xf32>
    %c1_18 = arith.constant 1 : index
    %c0_19 = arith.constant 0 : index
    %c0_20 = arith.constant 0 : index
    %25 = vector.load %arg4[%c1_18, %c0_19, %c0_20] : memref<2x1x8xf32, #tpu.memory_space<vmem>>, vector<1x1x8xf32>
    %26 = vector.shape_cast %25 : vector<1x1x8xf32> to vector<1x8xf32>
    %27 = vector.broadcast %26 : vector<1x8xf32> to vector<256x8xf32>
    %28 = arith.addf %24, %27 : vector<256x8xf32>
    %29 = arith.negf %28 : vector<256x8xf32>
    %30 = math.exp %29 : vector<256x8xf32>
    %cst_21 = arith.constant 1.000000e+00 : f32
    %31 = vector.broadcast %cst_21 : f32 to vector<256x8xf32>
    %32 = arith.addf %31, %30 : vector<256x8xf32>
    %33 = arith.divf %31, %32 : vector<256x8xf32>
    %34 = arith.mulf %28, %33 : vector<256x8xf32>
    %35 = arith.truncf %34 : vector<256x8xf32> to vector<256x8xbf16>
    %36 = vector.shape_cast %35 : vector<256x8xbf16> to vector<16x16x8xbf16>
    %c0_22 = arith.constant 0 : index
    %c0_23 = arith.constant 0 : index
    %c1_24 = arith.constant 1 : index
    %c0_25 = arith.constant 0 : index
    %c0_26 = arith.constant 0 : index
    %37 = vector.load %arg5[%c0_22, %c0_23, %c1_24, %c0_25, %c0_26] : memref<1x16x2x16x8xbf16, #tpu.memory_space<vmem>>, vector<1x16x1x16x8xbf16>
    %38 = vector.shape_cast %37 : vector<1x16x1x16x8xbf16> to vector<16x16x8xbf16>
    %39 = vector.shape_cast %36 : vector<16x16x8xbf16> to vector<1x16x1x16x8xbf16>
    tpu.vector_store %arg5[%c0_22, %c0_23, %c1_24, %c0_25, %c0_26], %39 {strides = array<i32>} : memref<1x16x2x16x8xbf16, #tpu.memory_space<vmem>>, vector<1x16x1x16x8xbf16>,
    return
  }
  func.func @transform_0(%arg0: i32, %arg1: i32) -> (i32, i32, i32, i32) {
    %c0_i32 = arith.constant 0 : i32
    %c0_i32_0 = arith.constant 0 : i32
    %c0_i32_1 = arith.constant 0 : i32
    return %arg0, %arg1, %c0_i32, %c0_i32_0 : i32, i32, i32, i32
  }
  func.func @transform_1(%arg0: i32, %arg1: i32) -> (i32, i32, i32) {
    %c0_i32 = arith.constant 0 : i32
    %c0_i32_0 = arith.constant 0 : i32
    %c0_i32_1 = arith.constant 0 : i32
    %c0_i32_2 = arith.constant 0 : i32
    return %c0_i32, %c0_i32_0, %c0_i32_1 : i32, i32, i32
  }
  func.func @transform_2(%arg0: i32, %arg1: i32) -> (i32, i32, i32) {
    %c0_i32 = arith.constant 0 : i32
    %c0_i32_0 = arith.constant 0 : i32
    %c0_i32_1 = arith.constant 0 : i32
    %c0_i32_2 = arith.constant 0 : i32
    return %c0_i32, %c0_i32_0, %c0_i32_1 : i32, i32, i32
  }
  func.func @transform_3(%arg0: i32, %arg1: i32) -> (i32, i32, i32, i32, i32) {
    %c0_i32 = arith.constant 0 : i32
    %c0_i32_0 = arith.constant 0 : i32
    %c0_i32_1 = arith.constant 0 : i32
    %c0_i32_2 = arith.constant 0 : i32
    return %arg0, %arg1, %c0_i32, %c0_i32_0, %c0_i32_1 : i32, i32, i32, i32, i32
  }
}

</mosaic_0001>

<bundles_post_ra>
// kernel: tpu_custom_call.1
= control target key start
LH: loop header
LB: loop body
LE: loop exit
PB: predicated region body
PF: predicated region fallthrough
CT: control target
= control target key end

     0   :  { %s2229_s12 = smov 0   ;;  %s2231_s13 = smov 0   ;;  %s2915_s0 = inlined_call_operand.vmem [shape: f32[2,16,16,4], index: 0, kind: input, shape index: {}]   ;;  %s2916_s1 = inlined_call_operand.vmem [shape: bf16[2,4,8], index: 1, kind: input, shape index: {}]   ;;  %s2917_s2 = inlined_call_operand.vmem [shape: f32[2,1,8], index: 2, kind: input, shape index: {}]   ;;  %s2918_s3 = inlined_call_operand.vmem [shape: bf16[2,16,2,16,8], index: 3, kind: output, shape index: {}]  }
   0x1   :  { %s2233_s14 = smov 0  }
   0x2 LB: > { %s25_s15 = sadd.s32 1, %s2203_s13  ;;  %p1530_p0 = scmp.ge.s32.totalorder %s2207_s14, 1  ;;  %s2207_s14 = sphi %s2233_s14, %s13_s14   ;;  %s2203_s13 = sphi %s2231_s13, %s2928_s13   ;;  %s2199_s12 = sphi %s2229_s12, %s2927_s12  }
   0x3   : > { %p27_p1 = scmp.ge.s32.totalorder %s25_s15, 2  ;;  %p159_p2 = scmp.lt.s32.totalorder %s2207_s14, 3 }
   0x5   : > { %s2930_s15 = smov (%p27_p1, %s25_s15), 0  ;;  %p160_p3 = pnand %p1530_p0, %p159_p2 }
   0x7   : > { %163 = sbr.rel (%p160_p3) target bundleno = 386 (0x182), region = 32 }
   0xe   : > { %v264_v0 = vld [vmem:[%s2916_s1] sm:$0x3]  ;;  %vm321_vm0 = vcmask 1041408   ;;  %v1616_v1 = vld [vmem:[%s2916_s1 + $0x2] sm:$0x3]  ;;  %p194_p4 = scmp.lt.s32.totalorder %s2199_s12, 1 }
   0xf   : > { %1901 = vmatprep.subr.msk.bf16.mxu0 %vm321_vm0, %v264_v0  ;;  %1902 = vmatprep.subr.msk.bf16.mxu1 %vm321_vm0, %v1616_v1  ;;  %v323_v2 = vsel %vm321_vm0, %v264_v0, 0  ;;  %v882_v3 = vsel %vm321_vm0, %v1616_v1, 0  ;;  %vm272_vm1 = vcmask 31744   ;;  %v2330_v52 = vld [vmem:[%s2917_s2] ss:$0 sm:$0xff]  ;;  %vm838_vm2 = vcmask 60416  }
  0x10   : > { %1834 = vmatpush3.bf16.msra.mxu0 %v323_v2  ;;  %1868 = vmatpush3.bf16.msra.mxu1 %v882_v3  ;;  %s2932_s12 = smov (!%p194_p4, %s2199_s12), 1  ;;  %v2335_v53 = vld [vmem:[%s2917_s2 + $0x1] ss:$0 sm:$0xff] }
  0x11   : > { %s1733_s20 = sshll.u32 %s2932_s12, 8 }
  0x12   : > { %s2261_s23 = scalar_lea.vmem %s2915_s0, %s1733_s20  ;;  %s2444_s30 = scalar_lea.vmem %s2918_s3, %s1733_s20 }
  0x13   : > { %v216_v4 = vld [vmem:[%s2261_s23] sm:$0xff]  ;;  %v217_v5 = vld [vmem:[%s2261_s23 + $0x8] sm:$0xff]  ;;  %v218_v6 = vld [vmem:[%s2261_s23 + $0x10] sm:$0xff] }
  0x14   : > { %v248_v7 = vpack.c.bf16 %v217_v5, %v216_v4  ;;  %v219_v8 = vld [vmem:[%s2261_s23 + $0x18] sm:$0xff]  ;;  %v220_v9 = vld [vmem:[%s2261_s23 + $0x20] sm:$0xff]  ;;  %v221_v10 = vld [vmem:[%s2261_s23 + $0x28] sm:$0xff] }
  0x15   : > { %v249_v11 = vpack.c.bf16 %v219_v8, %v218_v6  ;;  %v250_v12 = vpack.c.bf16 %v221_v10, %v220_v9  ;;  %v222_v13 = vld [vmem:[%s2261_s23 + $0x30] sm:$0xff]  ;;  %v223_v14 = vld [vmem:[%s2261_s23 + $0x38] sm:$0xff]  ;;  %v224_v15 = vld [vmem:[%s2261_s23 + $0x40] sm:$0xff] }
  0x16   : > { %1835 = vmatprep.mubr.msk.bf16.mxu0 %vm272_vm1, %v248_v7  ;;  %1869 = vmatprep.mubr.msk.bf16.mxu1 %vm272_vm1, %v248_v7  ;;  %v225_v16 = vld [vmem:[%s2261_s23 + $0x48] sm:$0xff]  ;;  %v251_v17 = vpack.c.bf16 %v223_v14, %v222_v13  ;;  %v226_v19 = vld [vmem:[%s2261_s23 + $0x50] sm:$0xff]  ;;  %v227_v20 = vld [vmem:[%s2261_s23 + $0x58] sm:$0xff] }
  0x17   : > { %1836 = vmatmul.mubr.msk.bf16.vlgmr.msra.gmra.mrb[0].mxu0 %vm272_vm1, %v249_v11  ;;  %1870 = vmatmul.mubr.msk.bf16.vlgmr.msra.gmra.mrb[0].mxu1 %vm272_vm1, %v249_v11  ;;  %v252_v18 = vpack.c.bf16 %v225_v16, %v224_v15  ;;  %v228_v21 = vld [vmem:[%s2261_s23 + $0x60] sm:$0xff]  ;;  %v229_v22 = vld [vmem:[%s2261_s23 + $0x68] sm:$0xff]  ;;  %v253_v23 = vpack.c.bf16 %v227_v20, %v226_v19  ;;  %v230_v25 = vld [vmem:[%s2261_s23 + $0x70] sm:$0xff] }
  0x18   : > { %1839 = vmatprep.mubr.msk.bf16.mxu0 %vm272_vm1, %v250_v12  ;;  %1873 = vmatprep.mubr.msk.bf16.mxu1 %vm272_vm1, %v250_v12  ;;  %v254_v24 = vpack.c.bf16 %v229_v22, %v228_v21  ;;  %v231_v26 = vld [vmem:[%s2261_s23 + $0x78] sm:$0xff]  ;;  %v232_v27 = vld [vmem:[%s2261_s23 + $0x80] sm:$0xff]  ;;  %v233_v28 = vld [vmem:[%s2261_s23 + $0x88] sm:$0xff] }
  0x19   : > { %v255_v29 = vpack.c.bf16 %v231_v26, %v230_v25  ;;  %v256_v30 = vpack.c.bf16 %v233_v28, %v232_v27  ;;  %v234_v31 = vld [vmem:[%s2261_s23 + $0x90] sm:$0xff]  ;;  %v235_v32 = vld [vmem:[%s2261_s23 + $0x98] sm:$0xff]  ;;  %v236_v33 = vld [vmem:[%s2261_s23 + $0xa0] sm:$0xff] }
  0x1a   : > { %v237_v34 = vld [vmem:[%s2261_s23 + $0xa8] sm:$0xff]  ;;  %v257_v35 = vpack.c.bf16 %v235_v32, %v234_v31  ;;  %v238_v37 = vld [vmem:[%s2261_s23 + $0xb0] sm:$0xff]  ;;  %v239_v38 = vld [vmem:[%s2261_s23 + $0xb8] sm:$0xff] }
  0x1b   : > { %v258_v36 = vpack.c.bf16 %v237_v34, %v236_v33  ;;  %v240_v39 = vld [vmem:[%s2261_s23 + $0xc0] sm:$0xff]  ;;  %v241_v40 = vld [vmem:[%s2261_s23 + $0xc8] sm:$0xff]  ;;  %v259_v41 = vpack.c.bf16 %v239_v38, %v238_v37  ;;  %v242_v43 = vld [vmem:[%s2261_s23 + $0xd0] sm:$0xff] }
  0x1c   : > { %v260_v42 = vpack.c.bf16 %v241_v40, %v240_v39  ;;  %v243_v44 = vld [vmem:[%s2261_s23 + $0xd8] sm:$0xff]  ;;  %v244_v45 = vld [vmem:[%s2261_s23 + $0xe0] sm:$0xff]  ;;  %v245_v46 = vld [vmem:[%s2261_s23 + $0xe8] sm:$0xff] }
  0x1d   : > { %v261_v47 = vpack.c.bf16 %v243_v44, %v242_v43  ;;  %v262_v48 = vpack.c.bf16 %v245_v46, %v244_v45  ;;  %v246_v49 = vld [vmem:[%s2261_s23 + $0xf0] sm:$0xff]  ;;  %v247_v50 = vld [vmem:[%s2261_s23 + $0xf8] sm:$0xff] }
  0x1e   : > { %v263_v51 = vpack.c.bf16 %v247_v50, %v246_v49 }
  0x1f   : > { %1840 = vmatmul.mubr.msk.bf16.gmra.mrb[4].mxu0 %vm272_vm1, %v251_v17  ;;  %1874 = vmatmul.mubr.msk.bf16.gmra.mrb[4].mxu1 %vm272_vm1, %v251_v17 }
  0x20   : > { %1843 = vmatprep.mubr.msk.bf16.mxu0 %vm272_vm1, %v252_v18  ;;  %1877 = vmatprep.mubr.msk.bf16.mxu1 %vm272_vm1, %v252_v18 }
  0x27   : > { %1844 = vmatmul.mubr.msk.bf16.gmra.mrb[8].mxu0 %vm272_vm1, %v253_v23  ;;  %1878 = vmatmul.mubr.msk.bf16.gmra.mrb[8].mxu1 %vm272_vm1, %v253_v23 }
  0x28   : > { %1847 = vmatprep.mubr.msk.bf16.mxu0 %vm272_vm1, %v254_v24  ;;  %1881 = vmatprep.mubr.msk.bf16.mxu1 %vm272_vm1, %v254_v24 }
  0x2f   : > { %1848 = vmatmul.mubr.msk.bf16.gmra.mrb[12].mxu0 %vm272_vm1, %v255_v29  ;;  %1882 = vmatmul.mubr.msk.bf16.gmra.mrb[12].mxu1 %vm272_vm1, %v255_v29 }
  0x30   : > { %1851 = vmatprep.mubr.msk.bf16.mxu0 %vm272_vm1, %v256_v30  ;;  %1885 = vmatprep.mubr.msk.bf16.mxu1 %vm272_vm1, %v256_v30 }
  0x37   : > { %1852 = vmatmul.mubr.msk.bf16.gmra.mrb[16].mxu0 %vm272_vm1, %v257_v35  ;;  %1886 = vmatmul.mubr.msk.bf16.gmra.mrb[16].mxu1 %vm272_vm1, %v257_v35 }
  0x38   : > { %1855 = vmatprep.mubr.msk.bf16.mxu0 %vm272_vm1, %v258_v36  ;;  %1889 = vmatprep.mubr.msk.bf16.mxu1 %vm272_vm1, %v258_v36 }
  0x3f   : > { %1856 = vmatmul.mubr.msk.bf16.gmra.mrb[20].mxu0 %vm272_vm1, %v259_v41  ;;  %1890 = vmatmul.mubr.msk.bf16.gmra.mrb[20].mxu1 %vm272_vm1, %v259_v41 }
  0x40   : > { %1859 = vmatprep.mubr.msk.bf16.mxu0 %vm272_vm1, %v260_v42  ;;  %1893 = vmatprep.mubr.msk.bf16.mxu1 %vm272_vm1, %v260_v42 }
  0x47   : > { %1860 = vmatmul.mubr.msk.bf16.gmra.mrb[24].mxu0 %vm272_vm1, %v261_v47  ;;  %1894 = vmatmul.mubr.msk.bf16.gmra.mrb[24].mxu1 %vm272_vm1, %v261_v47 }
  0x48   : > { %1863 = vmatprep.mubr.msk.bf16.mxu0 %vm272_vm1, %v262_v48  ;;  %1897 = vmatprep.mubr.msk.bf16.mxu1 %vm272_vm1, %v262_v48 }
  0x4f   : > { %1864 = vmatmul.mubr.msk.bf16.gmra.mrb[28].mxu0 %vm272_vm1, %v263_v51  ;;  %1898 = vmatmul.mubr.msk.bf16.gmra.mrb[28].mxu1 %vm272_vm1, %v263_v51 }
  0xea   : > { %v1837_v54 = vpop.f32.mrb[0].mxu0  ;;  %v1871_v55 = vpop.f32.mrb[0].mxu1 }
  0xeb   : > { %v2338_v56 = vadd.f32 %v1837_v54, %v2330_v52  ;;  %v2341_v57 = vadd.f32 %v1871_v55, %v2335_v53  ;;  %v359_v58 = vpop.f32.mrb[1].mxu0  ;;  %v918_v59 = vpop.f32.mrb[1].mxu1 }
  0xec   : > { %v2344_v60 = vadd.f32 %v2330_v52, %v359_v58  ;;  %v2347_v61 = vadd.f32 %v2335_v53, %v918_v59  ;;  %v1838_v62 = vpop.f32.mrb[2].mxu0  ;;  %v1872_v63 = vpop.f32.mrb[2].mxu1 }
  0xed   : > { %v1554_v0 = vmul.f32 -1.442695, %v2338_v56  ;;  %v1637_v1 = vmul.f32 -1.442695, %v2341_v57  ;;  %v2352_v2 = vadd.f32 %v1838_v62, %v2330_v52  ;;  %v2355_v3 = vadd.f32 %v1872_v63, %v2335_v53  ;;  %v362_v4 = vpop.f32.mrb[3].mxu0  ;;  %v921_v5 = vpop.f32.mrb[3].mxu1 }
  0xee   : > { %v1552_v6 = vmul.f32 -1.442695, %v2344_v60  ;;  %v1635_v7 = vmul.f32 -1.442695, %v2347_v61  ;;  %v2360_v8 = vadd.f32 %v2330_v52, %v362_v4  ;;  %v2363_v9 = vadd.f32 %v2335_v53, %v921_v5 }
  0xef   : > { %1927 = vpow2.f32 %v1554_v0  ;;  %v1555_v10 = vmul.f32 -1.442695, %v2352_v2  ;;  %v1638_v11 = vmul.f32 -1.442695, %v2355_v3 }
  0xf0   : > { %1929 = vpow2.f32 %v1637_v1  ;;  %v1553_v12 = vmul.f32 -1.442695, %v2360_v8  ;;  %v1636_v13 = vmul.f32 -1.442695, %v2363_v9 }
  0xf1   : > { %1931 = vpow2.f32 %v1552_v6 }
  0xf2   : > { %1933 = vpow2.f32 %v1635_v7  ;;  %v1841_v14 = vpop.f32.mrb[4].mxu0  ;;  %v1875_v15 = vpop.f32.mrb[4].mxu1 }
  0xf3   : > { %1935 = vpow2.f32 %v1555_v10  ;;  %v2370_v16 = vadd.f32 %v1841_v14, %v2330_v52  ;;  %v2373_v17 = vadd.f32 %v1875_v15, %v2335_v53  ;;  %v375_v18 = vpop.f32.mrb[5].mxu0  ;;  %v934_v19 = vpop.f32.mrb[5].mxu1 }
  0xf4   : > { %1937 = vpow2.f32 %v1638_v11  ;;  %v2376_v20 = vadd.f32 %v2330_v52, %v375_v18  ;;  %v2379_v21 = vadd.f32 %v2335_v53, %v934_v19  ;;  %v1842_v22 = vpop.f32.mrb[6].mxu0  ;;  %v1876_v23 = vpop.f32.mrb[6].mxu1 }
  0xf5   : > { %1939 = vpow2.f32 %v1553_v12  ;;  %v1558_v24 = vmul.f32 -1.442695, %v2370_v16  ;;  %v1641_v25 = vmul.f32 -1.442695, %v2373_v17  ;;  %v2384_v26 = vadd.f32 %v1842_v22, %v2330_v52  ;;  %v378_v27 = vpop.f32.mrb[7].mxu0  ;;  %v937_v28 = vpop.f32.mrb[7].mxu1 }
  0xf6   : > { %1941 = vpow2.f32 %v1636_v13  ;;  %v1556_v29 = vmul.f32 -1.442695, %v2376_v20  ;;  %v1639_v30 = vmul.f32 -1.442695, %v2379_v21  ;;  %v2390_v50 = vadd.f32 %v1876_v23, %v2335_v53 }
  0xf7   : > { %1943 = vpow2.f32 %v1558_v24  ;;  %v1559_v31 = vmul.f32 -1.442695, %v2384_v26  ;;  %v2393_v58 = vadd.f32 %v2330_v52, %v378_v27  ;;  %v2396_v63 = vadd.f32 %v2335_v53, %v937_v28 }
  0xf8   : > { %1945 = vpow2.f32 %v1641_v25  ;;  %v1642_v7 = vmul.f32 -1.442695, %v2390_v50 }
  0xf9   : > { %v1928_v32 = vpop.eup %1927  ;;  %1947 = vpow2.f32 %v1556_v29  ;;  %v1557_v14 = vmul.f32 -1.442695, %v2393_v58  ;;  %v1640_v24 = vmul.f32 -1.442695, %v2396_v63 }
  0xfa   : > { %v1930_v33 = vpop.eup %1929  ;;  %v584_v34 = vadd.f32 1.0, %v1928_v32  ;;  %1949 = vpow2.f32 %v1639_v30  ;;  %v1845_v35 = vpop.f32.mrb[8].mxu0 }
  0xfb   : > { %v1879_v36 = vpop.f32.mrb[8].mxu1  ;;  %v1932_v37 = vpop.eup %1931  ;;  %v1143_v38 = vadd.f32 1.0, %v1930_v33  ;;  %1951 = vpow2.f32 %v1559_v31  ;;  %v2399_v4 = vadd.f32 %v1845_v35, %v2330_v52 }
  0xfc   : > { %v391_v39 = vpop.f32.mrb[9].mxu0  ;;  %v950_v40 = vpop.f32.mrb[9].mxu1  ;;  %1953 = vrcp.f32 %v584_v34  ;;  %v582_v42 = vadd.f32 1.0, %v1932_v37  ;;  %v2403_v10 = vadd.f32 %v1879_v36, %v2335_v53 }
  0xfd   : > { %v1934_v41 = vpop.eup %1933  ;;  %v1846_v43 = vpop.f32.mrb[10].mxu0  ;;  %1955 = vrcp.f32 %v1143_v38  ;;  %v2409_v15 = vadd.f32 %v2330_v52, %v391_v39  ;;  %v2417_v25 = vadd.f32 %v2335_v53, %v950_v40  ;;  %v1562_v31 = vmul.f32 -1.442695, %v2399_v4 }
  0xfe   : > { %v1880_v44 = vpop.f32.mrb[10].mxu1  ;;  %v1936_v45 = vpop.eup %1935  ;;  %v1141_v46 = vadd.f32 1.0, %v1934_v41  ;;  %1957 = vrcp.f32 %v582_v42  ;;  %v1645_v36 = vmul.f32 -1.442695, %v2403_v10  ;;  %v2430_v37 = vadd.f32 %v1846_v43, %v2330_v52 }
  0xff   : > { %v394_v47 = vpop.f32.mrb[11].mxu0  ;;  %v1938_v48 = vpop.eup %1937  ;;  %v585_v49 = vadd.f32 1.0, %v1936_v45  ;;  %v1560_v41 = vmul.f32 -1.442695, %v2409_v15  ;;  %v2437_v42 = vadd.f32 %v1880_v44, %v2335_v53 }
 0x100   : > { %v953_v51 = vpop.f32.mrb[11].mxu1  ;;  %v1940_v54 = vpop.eup %1939  ;;  %1959 = vrcp.f32 %v1141_v46  ;;  %v1144_v55 = vadd.f32 1.0, %v1938_v48  ;;  %v1643_v46 = vmul.f32 -1.442695, %v2417_v25 }
 0x101   : > { %v1942_v59 = vpop.eup %1941  ;;  %1961 = vrcp.f32 %v585_v49  ;;  %v583_v62 = vadd.f32 1.0, %v1940_v54  ;;  %v2453_v54 = vadd.f32 %v2335_v53, %v953_v51 }
 0x102   : > { %v1944_v0 = vpop.eup %1943  ;;  %1963 = vrcp.f32 %v1144_v55  ;;  %v1142_v1 = vadd.f32 1.0, %v1942_v59  ;;  %v2405_v11 = vpop.f32.mrb[12].mxu0 }
 0x103   : > { %v1946_v5 = vpop.eup %1945  ;;  %1965 = vrcp.f32 %v583_v62  ;;  %v588_v6 = vadd.f32 1.0, %v1944_v0  ;;  %v2411_v18 = vpop.f32.mrb[12].mxu1  ;;  %v1563_v62 = vmul.f32 -1.442695, %v2430_v37 }
 0x104   : > { %v1948_v12 = vpop.eup %1947  ;;  %1967 = vrcp.f32 %v1142_v1  ;;  %v1147_v13 = vadd.f32 1.0, %v1946_v5  ;;  %v2413_v19 = vpop.f32.mrb[13].mxu0  ;;  %v1646_v5 = vmul.f32 -1.442695, %v2437_v42 }
 0x105   : > { %v1950_v22 = vpop.eup %1949  ;;  %1969 = vrcp.f32 %v588_v6  ;;  %v586_v23 = vadd.f32 1.0, %v1948_v12  ;;  %v2419_v27 = vpop.f32.mrb[13].mxu1 }
 0x106   : > { %v2421_v28 = vpop.f32.mrb[14].mxu0  ;;  %v1952_v29 = vpop.eup %1951  ;;  %1971 = vrcp.f32 %v1147_v13  ;;  %v1145_v30 = vadd.f32 1.0, %v1950_v22 }
 0x107   : > { %v2424_v32 = vpop.f32.mrb[14].mxu1  ;;  %v2426_v33 = vpop.f32.mrb[15].mxu0  ;;  %1973 = vrcp.f32 %v586_v23  ;;  %v589_v35 = vadd.f32 1.0, %v1952_v29 }
 0x108   : > { %v1954_v34 = vpop.eup %1953  ;;  %v2432_v38 = vpop.f32.mrb[15].mxu1  ;;  %1975 = vrcp.f32 %v1145_v30 }
 0x109   : > { %v1956_v39 = vpop.eup %1955  ;;  %v680_v40 = vmul.f32 %v1954_v34, %v2338_v56  ;;  %1977 = vrcp.f32 %v589_v35  ;;  %v2449_v56 = vadd.f32 %v2330_v52, %v394_v47 }
 0x10a   : > { %v1958_v45 = vpop.eup %1957  ;;  %v1239_v43 = vmul.f32 %v1956_v39, %v2341_v57  ;;  %1979 = vpow2.f32 %v1642_v7  ;;  %v2457_v0 = vpop.f32.mrb[16].mxu0 }
 0x10b   : > { %v1960_v48 = vpop.eup %1959  ;;  %v1737_v49 = vpack.c.bf16 %v680_v40, %v680_v40  ;;  %v678_v44 = vmul.f32 %v1958_v45, %v2344_v60  ;;  %1981 = vpow2.f32 %v1557_v14  ;;  %v2459_v47 = vpop.f32.mrb[16].mxu1  ;;  %v2474_v14 = vadd.f32 %v2405_v11, %v2330_v52 }
 0x10c   : > { %v1962_v55 = vpop.eup %1961  ;;  %v1769_v59 = vpack.c.bf16 %v1239_v43, %v1239_v43  ;;  %v1237_v57 = vmul.f32 %v1960_v48, %v2347_v61  ;;  %1983 = vpow2.f32 %v1640_v24  ;;  %v2465_v6 = vpop.f32.mrb[17].mxu0  ;;  %v1644_v40 = vmul.f32 -1.442695, %v2453_v54 }
 0x10d   : > { %v1964_v1 = vpop.eup %1963  ;;  %841 = vst.msk [vmem:[%s2444_s30 + $0x10] sm:$0xf] %vm838_vm2, %v1737_v49  ;;  %v1735_v60 = vpack.c.bf16 %v678_v44, %v678_v44  ;;  %v681_v51 = vmul.f32 %v1962_v55, %v2352_v2  ;;  %v2467_v61 = vpop.f32.mrb[17].mxu1  ;;  %1985 = vpow2.f32 %v1562_v31 }
 0x10e   : > { %v1966_v7 = vpop.eup %1965  ;;  %1701 = vst.msk [vmem:[%s2444_s30 + $0x18] sm:$0xf] %vm838_vm2, %v1769_v59  ;;  %v1767_v12 = vpack.c.bf16 %v1237_v57, %v1237_v57  ;;  %v1240_v13 = vmul.f32 %v1964_v1, %v2355_v3  ;;  %v2476_v2 = vpop.f32.mrb[18].mxu0  ;;  %1987 = vpow2.f32 %v1645_v36  ;;  %v2485_v3 = vadd.f32 %v2411_v18, %v2335_v53 }
 0x10f   : > { %v2478_v22 = vpop.f32.mrb[18].mxu1  ;;  %v1968_v23 = vpop.eup %1967  ;;  %839 = vst.msk [vmem:[%s2444_s30] sm:$0xf] %vm838_vm2, %v1735_v60  ;;  %v1738_v24 = vpack.c.bf16 %v681_v51, %v681_v51  ;;  %v679_v29 = vmul.f32 %v1966_v7, %v2360_v8  ;;  %1989 = vpow2.f32 %v1560_v41  ;;  %v1561_v8 = vmul.f32 -1.442695, %v2449_v56 }
 0x110   : > { %v2487_v30 = vpop.f32.mrb[19].mxu0  ;;  %v2489_v11 = vpop.f32.mrb[19].mxu1  ;;  %1699 = vst.msk [vmem:[%s2444_s30 + $0x8] sm:$0xf] %vm838_vm2, %v1767_v12  ;;  %v1770_v34 = vpack.c.bf16 %v1240_v13, %v1240_v13  ;;  %v1238_v35 = vmul.f32 %v1968_v23, %v2363_v9  ;;  %1991 = vpow2.f32 %v1643_v46  ;;  %v1566_v41 = vmul.f32 -1.442695, %v2474_v14 }
 0x111   : > { %v1970_v31 = vpop.eup %1969  ;;  %842 = vst.msk [vmem:[%s2444_s30 + $0x14] sm:$0xf] %vm838_vm2, %v1738_v24  ;;  %v1736_v18 = vpack.c.bf16 %v679_v29, %v679_v29  ;;  %1993 = vpow2.f32 %v1563_v62  ;;  %v1649_v46 = vmul.f32 -1.442695, %v2485_v3 }
 0x112   : > { %v1972_v36 = vpop.eup %1971  ;;  %v684_v39 = vmul.f32 %v1970_v31, %v2370_v16  ;;  %1702 = vst.msk [vmem:[%s2444_s30 + $0x1c] sm:$0xf] %vm838_vm2, %v1770_v34  ;;  %v1768_v43 = vpack.c.bf16 %v1238_v35, %v1238_v35  ;;  %1995 = vpow2.f32 %v1646_v5  ;;  %v2510_v59 = vpop.f32.mrb[20].mxu0 }
 0x113   : > { %v1974_v45 = vpop.eup %1973  ;;  %v1243_v9 = vmul.f32 %v1972_v36, %v2373_v17  ;;  %840 = vst.msk [vmem:[%s2444_s30 + $0x4] sm:$0xf] %vm838_vm2, %v1736_v18  ;;  %1997 = vpow2.f32 %v1561_v8  ;;  %v2512_v57 = vpop.f32.mrb[20].mxu1  ;;  %v2539_v18 = vadd.f32 %v2330_v52, %v2413_v19  ;;  %v2548_v19 = vadd.f32 %v2335_v53, %v2419_v27 }
 0x114   : > { %v1976_v48 = vpop.eup %1975  ;;  %v1741_v49 = vpack.c.bf16 %v684_v39, %v684_v39  ;;  %v682_v16 = vmul.f32 %v1974_v45, %v2376_v20  ;;  %1700 = vst.msk [vmem:[%s2444_s30 + $0xc] sm:$0xf] %vm838_vm2, %v1768_v43  ;;  %1999 = vpow2.f32 %v1644_v40  ;;  %v2517_v60 = vpop.f32.mrb[21].mxu0 }
 0x115   : > { %v1978_v44 = vpop.eup %1977  ;;  %v1773_v55 = vpack.c.bf16 %v1243_v9, %v1243_v9  ;;  %v1241_v17 = vmul.f32 %v1976_v48, %v2379_v21  ;;  %v2519_v51 = vpop.f32.mrb[21].mxu1  ;;  %2001 = vpow2.f32 %v1566_v41 }
 0x116   : > { %v1980_v62 = vpop.eup %1979  ;;  %845 = vst.msk [vmem:[%s2444_s30 + $0x30] sm:$0xf] %vm838_vm2, %v1741_v49  ;;  %v1739_v20 = vpack.c.bf16 %v682_v16, %v682_v16  ;;  %v685_v1 = vmul.f32 %v1978_v44, %v2384_v26  ;;  %v2523_v12 = vpop.f32.mrb[22].mxu0  ;;  %2003 = vpow2.f32 %v1649_v46  ;;  %v1564_v44 = vmul.f32 -1.442695, %v2539_v18 }
 0x117   : > { %v1982_v5 = vpop.eup %1981  ;;  %1705 = vst.msk [vmem:[%s2444_s30 + $0x38] sm:$0xf] %vm838_vm2, %v1773_v55  ;;  %v1771_v21 = vpack.c.bf16 %v1241_v17, %v1241_v17  ;;  %v1148_v7 = vadd.f32 1.0, %v1980_v62  ;;  %v2525_v13 = vpop.f32.mrb[22].mxu1 }
 0x118   : > { %v1984_v23 = vpop.eup %1983  ;;  %843 = vst.msk [vmem:[%s2444_s30 + $0x20] sm:$0xf] %vm838_vm2, %v1739_v20  ;;  %v1742_v26 = vpack.c.bf16 %v685_v1, %v685_v1  ;;  %v587_v24 = vadd.f32 1.0, %v1982_v5  ;;  %v2529_v29 = vpop.f32.mrb[23].mxu0  ;;  %v2556_v1 = vadd.f32 %v2421_v28, %v2330_v52  ;;  %v2560_v5 = vadd.f32 %v2424_v32, %v2335_v53 }
 0x119   : > { %v2531_v31 = vpop.f32.mrb[23].mxu1  ;;  %v1986_v34 = vpop.eup %1985  ;;  %1703 = vst.msk [vmem:[%s2444_s30 + $0x28] sm:$0xf] %vm838_vm2, %v1771_v21  ;;  %2005 = vrcp.f32 %v1148_v7  ;;  %v1146_v35 = vadd.f32 1.0, %v1984_v23 }
 0x11a   : > { %v1988_v8 = vpop.eup %1987  ;;  %846 = vst.msk [vmem:[%s2444_s30 + $0x34] sm:$0xf] %vm838_vm2, %v1742_v26  ;;  %2007 = vrcp.f32 %v587_v24  ;;  %v592_v36 = vadd.f32 1.0, %v1986_v34  ;;  %v2541_v48 = vpop.f32.mrb[24].mxu0  ;;  %v2568_v26 = vadd.f32 %v2330_v52, %v2426_v33  ;;  %v2572_v24 = vadd.f32 %v2335_v53, %v2432_v38 }
 0x11b   : > { %v1990_v39 = vpop.eup %1989  ;;  %2009 = vrcp.f32 %v1146_v35  ;;  %v1151_v40 = vadd.f32 1.0, %v1988_v8  ;;  %v2543_v49 = vpop.f32.mrb[24].mxu1  ;;  %v2580_v8 = vadd.f32 %v2457_v0, %v2330_v52  ;;  %v1647_v38 = vmul.f32 -1.442695, %v2548_v19 }
 0x11c   : > { %v1992_v45 = vpop.eup %1991  ;;  %2011 = vrcp.f32 %v592_v36  ;;  %v590_v43 = vadd.f32 1.0, %v1990_v39  ;;  %v2550_v55 = vpop.f32.mrb[25].mxu0  ;;  %v2584_v36 = vadd.f32 %v2459_v47, %v2335_v53  ;;  %v1650_v0 = vmul.f32 -1.442695, %v2560_v5 }
 0x11d   : > { %v1994_v9 = vpop.eup %1993  ;;  %2013 = vrcp.f32 %v1151_v40  ;;  %v1149_v41 = vadd.f32 1.0, %v1992_v45  ;;  %v2552_v17 = vpop.f32.mrb[25].mxu1  ;;  %v2589_v40 = vadd.f32 %v2330_v52, %v2465_v6  ;;  %v1570_v6 = vmul.f32 -1.442695, %v2580_v8 }
 0x11e   : > { %v1996_v16 = vpop.eup %1995  ;;  %2015 = vrcp.f32 %v590_v43  ;;  %v593_v46 = vadd.f32 1.0, %v1994_v9  ;;  %v2562_v21 = vpop.f32.mrb[26].mxu0  ;;  %v1567_v9 = vmul.f32 -1.442695, %v2556_v1 }
 0x11f   : > { %v1998_v62 = vpop.eup %1997  ;;  %2017 = vrcp.f32 %v1149_v41  ;;  %v1152_v20 = vadd.f32 1.0, %v1996_v16  ;;  %v2564_v7 = vpop.f32.mrb[26].mxu1  ;;  %v1565_v16 = vmul.f32 -1.442695, %v2568_v26 }
 0x120   : > { %v2000_v27 = vpop.eup %1999  ;;  %2019 = vrcp.f32 %v593_v46  ;;  %v591_v23 = vadd.f32 1.0, %v1998_v62  ;;  %v2574_v28 = vpop.f32.mrb[27].mxu0  ;;  %v1648_v46 = vmul.f32 -1.442695, %v2572_v24 }
 0x121   : > { %v2576_v34 = vpop.f32.mrb[27].mxu1  ;;  %v2002_v32 = vpop.eup %2001  ;;  %2021 = vrcp.f32 %v1152_v20  ;;  %v1150_v35 = vadd.f32 1.0, %v2000_v27  ;;  %v1653_v27 = vmul.f32 -1.442695, %v2584_v36 }
 0x122   : > { %2919 = vst [vmem:[#allocation2_spill] sm:$0xff] %v2576_v34  ;;  %v2004_v33 = vpop.eup %2003  ;;  %2023 = vrcp.f32 %v591_v23  ;;  %v596_v39 = vadd.f32 1.0, %v2002_v32  ;;  %v2599_v23 = vpop.f32.mrb[28].mxu0 }
 0x123   : > { %v2006_v45 = vpop.eup %2005  ;;  %2025 = vrcp.f32 %v1150_v35  ;;  %v1155_v43 = vadd.f32 1.0, %v2004_v33  ;;  %v2601_v32 = vpop.f32.mrb[28].mxu1 }
 0x124   : > { %v2008_v41 = vpop.eup %2007  ;;  %v1244_v47 = vmul.f32 %v2006_v45, %v2390_v50  ;;  %2027 = vrcp.f32 %v596_v39  ;;  %2920 = vst [vmem:[#allocation3_spill] sm:$0xff] %v2601_v32  ;;  %v1568_v39 = vmul.f32 -1.442695, %v2589_v40  ;;  %v2605_v45 = vpop.f32.mrb[29].mxu0  ;;  %v2612_v32 = vadd.f32 %v2335_v53, %v2467_v61 }
 0x125   : > { %v2010_v62 = vpop.eup %2009  ;;  %v683_v20 = vmul.f32 %v2008_v41, %v2393_v58  ;;  %2029 = vrcp.f32 %v1155_v43  ;;  %v2607_v58 = vpop.f32.mrb[29].mxu1 }
 0x126   : > { %v2012_v35 = vpop.eup %2011  ;;  %v1774_v50 = vpack.c.bf16 %v1244_v47, %v1244_v47  ;;  %v1242_v33 = vmul.f32 %v2010_v62, %v2396_v63  ;;  %2031 = vpow2.f32 %v1564_v44  ;;  %2921 = vst [vmem:[#allocation4_spill] sm:$0xff] %v2607_v58  ;;  %v2614_v47 = vpop.f32.mrb[30].mxu0 }
 0x127   : > { %v2014_v43 = vpop.eup %2013  ;;  %v1740_v41 = vpack.c.bf16 %v683_v20, %v683_v20  ;;  %v688_v34 = vmul.f32 %v2012_v35, %v2399_v4  ;;  %2033 = vpow2.f32 %v1647_v38  ;;  %v2616_v63 = vpop.f32.mrb[30].mxu1  ;;  %v2623_v4 = vadd.f32 %v2476_v2, %v2330_v52 }
 0x128   : > { %2922 = vst [vmem:[#allocation5_spill] sm:$0xff] %v2616_v63  ;;  %v2016_v44 = vpop.eup %2015  ;;  %1706 = vst.msk [vmem:[%s2444_s30 + $0x3c] sm:$0xf] %vm838_vm2, %v1774_v50  ;;  %v1772_v62 = vpack.c.bf16 %v1242_v33, %v1242_v33  ;;  %v1247_v58 = vmul.f32 %v2014_v43, %v2403_v10  ;;  %2035 = vpow2.f32 %v1567_v9  ;;  %v2625_v38 = vpop.f32.mrb[31].mxu0  ;;  %v2634_v10 = vadd.f32 %v2478_v22, %v2335_v53 }
 0x129   : > { %v2627_v61 = vpop.f32.mrb[31].mxu1  ;;  %v2018_v20 = vpop.eup %2017  ;;  %844 = vst.msk [vmem:[%s2444_s30 + $0x24] sm:$0xf] %vm838_vm2, %v1740_v41  ;;  %v1745_v35 = vpack.c.bf16 %v688_v34, %v688_v34  ;;  %v686_v63 = vmul.f32 %v2016_v44, %v2409_v15  ;;  %2037 = vpow2.f32 %v1650_v0  ;;  %v2641_v33 = vadd.f32 %v2330_v52, %v2487_v30 }
 0x12a   : > { %v2020_v9 = vpop.eup %2019  ;;  %1704 = vst.msk [vmem:[%s2444_s30 + $0x2c] sm:$0xf] %vm838_vm2, %v1772_v62  ;;  %v1777_v2 = vpack.c.bf16 %v1247_v58, %v1247_v58  ;;  %v1245_v50 = vmul.f32 %v2018_v20, %v2417_v25  ;;  %2039 = vpow2.f32 %v1565_v16  ;;  %v1651_v22 = vmul.f32 -1.442695, %v2612_v32 }
 0x12b   : > { %v2022_v34 = vpop.eup %2021  ;;  %849 = vst.msk [vmem:[%s2444_s30 + $0x50] sm:$0xf] %vm838_vm2, %v1745_v35  ;;  %v1743_v15 = vpack.c.bf16 %v686_v63, %v686_v63  ;;  %v689_v0 = vmul.f32 %v2020_v9, %v2430_v37  ;;  %2041 = vpow2.f32 %v1648_v46  ;;  %v1571_v30 = vmul.f32 -1.442695, %v2623_v4 }
 0x12c   : > { %v2024_v43 = vpop.eup %2023  ;;  %1709 = vst.msk [vmem:[%s2444_s30 + $0x58] sm:$0xf] %vm838_vm2, %v1777_v2  ;;  %v1775_v25 = vpack.c.bf16 %v1245_v50, %v1245_v50  ;;  %v1248_v16 = vmul.f32 %v2022_v34, %v2437_v42  ;;  %2043 = vpow2.f32 %v1570_v6  ;;  %v1654_v46 = vmul.f32 -1.442695, %v2634_v10 }
 0x12d   : > { %v2026_v58 = vpop.eup %2025  ;;  %847 = vst.msk [vmem:[%s2444_s30 + $0x40] sm:$0xf] %vm838_vm2, %v1743_v15  ;;  %v1746_v41 = vpack.c.bf16 %v689_v0, %v689_v0  ;;  %v687_v37 = vmul.f32 %v2024_v43, %v2449_v56  ;;  %2045 = vpow2.f32 %v1653_v27  ;;  %v1569_v6 = vmul.f32 -1.442695, %v2641_v33 }
 0x12e   : > { %v2028_v63 = vpop.eup %2027  ;;  %1707 = vst.msk [vmem:[%s2444_s30 + $0x48] sm:$0xf] %vm838_vm2, %v1775_v25  ;;  %v1778_v44 = vpack.c.bf16 %v1248_v16, %v1248_v16  ;;  %v1246_v42 = vmul.f32 %v2026_v58, %v2453_v54  ;;  %2047 = vpow2.f32 %v1568_v39  ;;  %v2675_v16 = vadd.f32 %v2335_v53, %v2489_v11 }
 0x12f   : > { %v2030_v62 = vpop.eup %2029  ;;  %850 = vst.msk [vmem:[%s2444_s30 + $0x54] sm:$0xf] %vm838_vm2, %v1746_v41  ;;  %v1744_v20 = vpack.c.bf16 %v687_v37, %v687_v37  ;;  %v692_v56 = vmul.f32 %v2028_v63, %v2474_v14  ;;  %2049 = vpow2.f32 %v1651_v22 }
 0x130   : > { %v2032_v27 = vpop.eup %2031  ;;  %1710 = vst.msk [vmem:[%s2444_s30 + $0x5c] sm:$0xf] %vm838_vm2, %v1778_v44  ;;  %v1776_v35 = vpack.c.bf16 %v1246_v42, %v1246_v42  ;;  %v1251_v9 = vmul.f32 %v2030_v62, %v2485_v3  ;;  %2051 = vpow2.f32 %v1571_v30  ;;  %v2679_v44 = vadd.f32 %v2510_v59, %v2330_v52 }
 0x131   : > { %v2034_v54 = vpop.eup %2033  ;;  %848 = vst.msk [vmem:[%s2444_s30 + $0x44] sm:$0xf] %vm838_vm2, %v1744_v20  ;;  %v1749_v39 = vpack.c.bf16 %v692_v56, %v692_v56  ;;  %v594_v2 = vadd.f32 1.0, %v2032_v27  ;;  %2053 = vpow2.f32 %v1654_v46  ;;  %v2683_v42 = vadd.f32 %v2512_v57, %v2335_v53 }
 0x132   : > { %v2036_v50 = vpop.eup %2035  ;;  %1708 = vst.msk [vmem:[%s2444_s30 + $0x4c] sm:$0xf] %vm838_vm2, %v1776_v35  ;;  %v1781_v14 = vpack.c.bf16 %v1251_v9, %v1251_v9  ;;  %v1153_v34 = vadd.f32 1.0, %v2034_v54  ;;  %2055 = vpow2.f32 %v1569_v6  ;;  %v1652_v62 = vmul.f32 -1.442695, %v2675_v16 }
 0x133   : > { %v2038_v15 = vpop.eup %2037  ;;  %853 = vst.msk [vmem:[%s2444_s30 + $0x70] sm:$0xf] %vm838_vm2, %v1749_v39  ;;  %2057 = vrcp.f32 %v594_v2  ;;  %v597_v0 = vadd.f32 1.0, %v2036_v50  ;;  %v2688_v20 = vadd.f32 %v2330_v52, %v2517_v60  ;;  %v2692_v59 = vadd.f32 %v2335_v53, %v2519_v51 }
 0x134   : > { %v2040_v3 = vpop.eup %2039  ;;  %1713 = vst.msk [vmem:[%s2444_s30 + $0x78] sm:$0xf] %vm838_vm2, %v1781_v14  ;;  %2059 = vrcp.f32 %v1153_v34  ;;  %v1156_v22 = vadd.f32 1.0, %v2038_v15  ;;  %v2696_v57 = vadd.f32 %v2523_v12, %v2330_v52  ;;  %v2700_v54 = vadd.f32 %v2525_v13, %v2335_v53 }
 0x135   : > { %v2042_v43 = vpop.eup %2041  ;;  %2061 = vrcp.f32 %v597_v0  ;;  %v595_v25 = vadd.f32 1.0, %v2040_v3  ;;  %v2704_v60 = vadd.f32 %v2330_v52, %v2529_v29  ;;  %v1574_v51 = vmul.f32 -1.442695, %v2679_v44 }
 0x136   : > { %v2044_v30 = vpop.eup %2043  ;;  %2063 = vrcp.f32 %v1156_v22  ;;  %v1154_v58 = vadd.f32 1.0, %v2042_v43  ;;  %v1657_v50 = vmul.f32 -1.442695, %v2683_v42  ;;  %v1572_v34 = vmul.f32 -1.442695, %v2688_v20 }
 0x137   : > { %v2046_v41 = vpop.eup %2045  ;;  %2065 = vrcp.f32 %v595_v25  ;;  %v600_v37 = vadd.f32 1.0, %v2044_v30  ;;  %v2711_v13 = vadd.f32 %v2335_v53, %v2531_v31  ;;  %v1655_v0 = vmul.f32 -1.442695, %v2692_v59 }
 0x138   : > { %v2048_v46 = vpop.eup %2047  ;;  %2067 = vrcp.f32 %v1154_v58  ;;  %v1159_v63 = vadd.f32 1.0, %v2046_v41  ;;  %v1575_v3 = vmul.f32 -1.442695, %v2696_v57  ;;  %v1658_v25 = vmul.f32 -1.442695, %v2700_v54 }
 0x139   : > { %v2050_v6 = vpop.eup %2049  ;;  %2069 = vrcp.f32 %v600_v37  ;;  %v598_v11 = vadd.f32 1.0, %v2048_v46  ;;  %v1573_v30 = vmul.f32 -1.442695, %v2704_v60 }
 0x13a   : > { %v2052_v56 = vpop.eup %2051  ;;  %2071 = vrcp.f32 %v1159_v63  ;;  %v1157_v27 = vadd.f32 1.0, %v2050_v6 }
 0x13b   : > { %v2054_v35 = vpop.eup %2053  ;;  %2073 = vrcp.f32 %v598_v11  ;;  %v601_v9 = vadd.f32 1.0, %v2052_v56 }
 0x13c   : > { %v2056_v39 = vpop.eup %2055  ;;  %2075 = vrcp.f32 %v1157_v27  ;;  %v1160_v2 = vadd.f32 1.0, %v2054_v35  ;;  %v2738_v27 = vadd.f32 %v2330_v52, %v2550_v55 }
 0x13d   : > { %v2058_v12 = vpop.eup %2057  ;;  %2077 = vrcp.f32 %v601_v9  ;;  %v599_v14 = vadd.f32 1.0, %v2056_v39 }
 0x13e   : > { %v2060_v15 = vpop.eup %2059  ;;  %v690_v29 = vmul.f32 %v2058_v12, %v2539_v18  ;;  %2079 = vrcp.f32 %v1160_v2  ;;  %v2722_v18 = vadd.f32 %v2541_v48, %v2330_v52  ;;  %v2731_v48 = vadd.f32 %v2543_v49, %v2335_v53 }
 0x13f   : > { %v2062_v22 = vpop.eup %2061  ;;  %v1249_v43 = vmul.f32 %v2060_v15, %v2548_v19  ;;  %2081 = vrcp.f32 %v599_v14  ;;  %v1656_v19 = vmul.f32 -1.442695, %v2711_v13  ;;  %v2745_v49 = vadd.f32 %v2335_v53, %v2552_v17 }
 0x140   : > { %v2064_v58 = vpop.eup %2063  ;;  %v1747_v31 = vpack.c.bf16 %v690_v29, %v690_v29  ;;  %v693_v41 = vmul.f32 %v2062_v22, %v2556_v1  ;;  %2083 = vpow2.f32 %v1652_v62  ;;  %v1578_v52 = vmul.f32 -1.442695, %v2722_v18 }
 0x141   : > { %v2066_v37 = vpop.eup %2065  ;;  %v1779_v46 = vpack.c.bf16 %v1249_v43, %v1249_v43  ;;  %v1252_v63 = vmul.f32 %v2064_v58, %v2560_v5  ;;  %2085 = vpow2.f32 %v1574_v51  ;;  %v1661_v53 = vmul.f32 -1.442695, %v2731_v48 }
 0x142   : > { %v2068_v6 = vpop.eup %2067  ;;  %851 = vst.msk [vmem:[%s2444_s30 + $0x60] sm:$0xf] %vm838_vm2, %v1747_v31  ;;  %v1750_v11 = vpack.c.bf16 %v693_v41, %v693_v41  ;;  %v691_v56 = vmul.f32 %v2066_v37, %v2568_v26  ;;  %2087 = vpow2.f32 %v1657_v50  ;;  %v1576_v12 = vmul.f32 -1.442695, %v2738_v27 }
 0x143   : > { %v2070_v1 = vpop.eup %2069  ;;  %1711 = vst.msk [vmem:[%s2444_s30 + $0x68] sm:$0xf] %vm838_vm2, %v1779_v46  ;;  %v1782_v5 = vpack.c.bf16 %v1252_v63, %v1252_v63  ;;  %v1250_v62 = vmul.f32 %v2068_v6, %v2572_v24  ;;  %2089 = vpow2.f32 %v1572_v34  ;;  %v1659_v15 = vmul.f32 -1.442695, %v2745_v49 }
 0x144   : > { %v2072_v35 = vpop.eup %2071  ;;  %854 = vst.msk [vmem:[%s2444_s30 + $0x74] sm:$0xf] %vm838_vm2, %v1750_v11  ;;  %v1748_v26 = vpack.c.bf16 %v691_v56, %v691_v56  ;;  %v696_v9 = vmul.f32 %v2070_v1, %v2580_v8  ;;  %2091 = vpow2.f32 %v1655_v0 }
 0x145   : > { %v2074_v39 = vpop.eup %2073  ;;  %1714 = vst.msk [vmem:[%s2444_s30 + $0x7c] sm:$0xf] %vm838_vm2, %v1782_v5  ;;  %v1780_v24 = vpack.c.bf16 %v1250_v62, %v1250_v62  ;;  %v1255_v2 = vmul.f32 %v2072_v35, %v2584_v36  ;;  %2093 = vpow2.f32 %v1575_v3  ;;  %v2183_v35 = vld [vmem:[%s2917_s2] ss:$0 sm:$0xff] }
 0x146   : > { %v2076_v55 = vpop.eup %2075  ;;  %852 = vst.msk [vmem:[%s2444_s30 + $0x64] sm:$0xf] %vm838_vm2, %v1748_v26  ;;  %v1753_v8 = vpack.c.bf16 %v696_v9, %v696_v9  ;;  %v694_v51 = vmul.f32 %v2074_v39, %v2589_v40  ;;  %2095 = vpow2.f32 %v1658_v25  ;;  %v2781_v26 = vadd.f32 %v2183_v35, %v2562_v21  ;;  %v2184_v9 = vld [vmem:[%s2917_s2 + $0x1] ss:$0 sm:$0xff] }
 0x147   : > { %v2078_v17 = vpop.eup %2077  ;;  %1712 = vst.msk [vmem:[%s2444_s30 + $0x6c] sm:$0xf] %vm838_vm2, %v1780_v24  ;;  %v1785_v50 = vpack.c.bf16 %v1255_v2, %v1255_v2  ;;  %v1253_v36 = vmul.f32 %v2076_v55, %v2612_v32  ;;  %2097 = vpow2.f32 %v1573_v30  ;;  %v2787_v39 = vadd.f32 %v2184_v9, %v2564_v7  ;;  %v2923_v55 = vld [vmem:[#allocation2_spill] sm:$0xff] }
 0x148   : > { %v2080_v14 = vpop.eup %2079  ;;  %857 = vst.msk [vmem:[%s2444_s30 + $0x90] sm:$0xf] %vm838_vm2, %v1753_v8  ;;  %v1751_v34 = vpack.c.bf16 %v694_v51, %v694_v51  ;;  %v697_v40 = vmul.f32 %v2078_v17, %v2623_v4  ;;  %2099 = vpow2.f32 %v1656_v19  ;;  %v2793_v8 = vadd.f32 %v2184_v9, %v2923_v55  ;;  %v2924_v17 = vld [vmem:[#allocation3_spill] sm:$0xff] }
 0x149   : > { %v2082_v29 = vpop.eup %2081  ;;  %1717 = vst.msk [vmem:[%s2444_s30 + $0x98] sm:$0xf] %vm838_vm2, %v1785_v50  ;;  %v1783_v0 = vpack.c.bf16 %v1253_v36, %v1253_v36  ;;  %v1256_v32 = vmul.f32 %v2080_v14, %v2634_v10  ;;  %2101 = vpow2.f32 %v1578_v52  ;;  %v2790_v52 = vadd.f32 %v2183_v35, %v2574_v28  ;;  %v2925_v28 = vld [vmem:[#allocation4_spill] sm:$0xff] }
 0x14a   : > { %v2084_v3 = vpop.eup %2083  ;;  %855 = vst.msk [vmem:[%s2444_s30 + $0x80] sm:$0xf] %vm838_vm2, %v1751_v34  ;;  %v1754_v22 = vpack.c.bf16 %v697_v40, %v697_v40  ;;  %v695_v43 = vmul.f32 %v2082_v29, %v2641_v33  ;;  %2103 = vpow2.f32 %v1661_v53  ;;  %v2796_v53 = vadd.f32 %v2183_v35, %v2599_v23 }
 0x14b   : > { %v2086_v4 = vpop.eup %2085  ;;  %1715 = vst.msk [vmem:[%s2444_s30 + $0x88] sm:$0xf] %vm838_vm2, %v1783_v0  ;;  %v1786_v25 = vpack.c.bf16 %v1256_v32, %v1256_v32  ;;  %v1158_v30 = vadd.f32 1.0, %v2084_v3  ;;  %2105 = vpow2.f32 %v1576_v12  ;;  %v2799_v50 = vadd.f32 %v2184_v9, %v2924_v17 }
 0x14c   : > { %v2088_v58 = vpop.eup %2087  ;;  %858 = vst.msk [vmem:[%s2444_s30 + $0x94] sm:$0xf] %vm838_vm2, %v1754_v22  ;;  %v1752_v10 = vpack.c.bf16 %v695_v43, %v695_v43  ;;  %v604_v31 = vadd.f32 1.0, %v2086_v4  ;;  %2107 = vpow2.f32 %v1659_v15  ;;  %v2802_v12 = vadd.f32 %v2183_v35, %v2605_v45 }
 0x14d   : > { %v2090_v41 = vpop.eup %2089  ;;  %1718 = vst.msk [vmem:[%s2444_s30 + $0x9c] sm:$0xf] %vm838_vm2, %v1786_v25  ;;  %2109 = vrcp.f32 %v1158_v30  ;;  %v1163_v37 = vadd.f32 1.0, %v2088_v58  ;;  %v2805_v14 = vadd.f32 %v2184_v9, %v2925_v28  ;;  %v1579_v15 = vmul.f32 -1.442695, %v2781_v26 }
 0x14e   : > { %v2092_v33 = vpop.eup %2091  ;;  %856 = vst.msk [vmem:[%s2444_s30 + $0x84] sm:$0xf] %vm838_vm2, %v1752_v10  ;;  %2111 = vrcp.f32 %v604_v31  ;;  %v602_v46 = vadd.f32 1.0, %v2090_v41  ;;  %v1662_v23 = vmul.f32 -1.442695, %v2787_v39 }
 0x14f   : > { %v2094_v63 = vpop.eup %2093  ;;  %2113 = vrcp.f32 %v1163_v37  ;;  %v1161_v19 = vadd.f32 1.0, %v2092_v33  ;;  %v1577_v32 = vmul.f32 -1.442695, %v2790_v52  ;;  %v1660_v3 = vmul.f32 -1.442695, %v2793_v8 }
 0x150   : > { %v2096_v6 = vpop.eup %2095  ;;  %2115 = vrcp.f32 %v602_v46  ;;  %v605_v11 = vadd.f32 1.0, %v2094_v63  ;;  %v1582_v43 = vmul.f32 -1.442695, %v2796_v53  ;;  %v1665_v4 = vmul.f32 -1.442695, %v2799_v50 }
 0x151   : > { %v2098_v56 = vpop.eup %2097  ;;  %2117 = vrcp.f32 %v1161_v19  ;;  %v1164_v1 = vadd.f32 1.0, %v2096_v6  ;;  %v1580_v58 = vmul.f32 -1.442695, %v2802_v12  ;;  %v1663_v10 = vmul.f32 -1.442695, %v2805_v14 }
 0x152   : > { %v2100_v5 = vpop.eup %2099  ;;  %2119 = vrcp.f32 %v605_v11  ;;  %v603_v62 = vadd.f32 1.0, %v2098_v56 }
 0x153   : > { %v2102_v24 = vpop.eup %2101  ;;  %2121 = vrcp.f32 %v1164_v1  ;;  %v1162_v2 = vadd.f32 1.0, %v2100_v5  ;;  %v2835_v5 = vadd.f32 %v2184_v9, %v2627_v61 }
 0x154   : > { %v2104_v51 = vpop.eup %2103  ;;  %2123 = vrcp.f32 %v603_v62  ;;  %v608_v21 = vadd.f32 1.0, %v2102_v24 }
 0x155   : > { %v2106_v7 = vpop.eup %2105  ;;  %2125 = vrcp.f32 %v1162_v2  ;;  %v1167_v36 = vadd.f32 1.0, %v2104_v51 }
 0x156   : > { %v2108_v34 = vpop.eup %2107  ;;  %2127 = vrcp.f32 %v608_v21  ;;  %v606_v40 = vadd.f32 1.0, %v2106_v7  ;;  %v1664_v7 = vmul.f32 -1.442695, %v2835_v5 }
 0x157   : > { %v2110_v29 = vpop.eup %2109  ;;  %2129 = vrcp.f32 %v1167_v36  ;;  %v1165_v0 = vadd.f32 1.0, %v2108_v34 }
 0x158   : > { %v2112_v22 = vpop.eup %2111  ;;  %v1254_v45 = vmul.f32 %v2110_v29, %v2675_v16  ;;  %2131 = vrcp.f32 %v606_v40  ;;  %v2819_v16 = vadd.f32 %v2183_v35, %v2614_v47  ;;  %v2829_v47 = vadd.f32 %v2183_v35, %v2625_v38 }
 0x159   : > { %v2114_v25 = vpop.eup %2113  ;;  %v700_v30 = vmul.f32 %v2112_v22, %v2679_v44  ;;  %2133 = vrcp.f32 %v1165_v0  ;;  %v2926_v44 = vld [vmem:[#allocation5_spill] sm:$0xff] }
 0x15a   : > { %v2116_v31 = vpop.eup %2115  ;;  %v1784_v41 = vpack.c.bf16 %v1254_v45, %v1254_v45  ;;  %v1259_v37 = vmul.f32 %v2114_v25, %v2683_v42  ;;  %2135 = vpow2.f32 %v1579_v15  ;;  %v2823_v19 = vadd.f32 %v2184_v9, %v2926_v44 }
 0x15b   : > { %v2118_v33 = vpop.eup %2117  ;;  %v1757_v46 = vpack.c.bf16 %v700_v30, %v700_v30  ;;  %v698_v63 = vmul.f32 %v2116_v31, %v2688_v20  ;;  %2137 = vpow2.f32 %v1662_v23  ;;  %v1583_v38 = vmul.f32 -1.442695, %v2819_v16 }
 0x15c   : > { %v2120_v6 = vpop.eup %2119  ;;  %1716 = vst.msk [vmem:[%s2444_s30 + $0x8c] sm:$0xf] %vm838_vm2, %v1784_v41  ;;  %v1789_v11 = vpack.c.bf16 %v1259_v37, %v1259_v37  ;;  %v1257_v56 = vmul.f32 %v2118_v33, %v2692_v59  ;;  %2139 = vpow2.f32 %v1577_v32  ;;  %v1666_v61 = vmul.f32 -1.442695, %v2823_v19 }
 0x15d   : > { %v2122_v42 = vpop.eup %2121  ;;  %861 = vst.msk [vmem:[%s2444_s30 + $0xb0] sm:$0xf] %vm838_vm2, %v1757_v46  ;;  %v1755_v20 = vpack.c.bf16 %v698_v63, %v698_v63  ;;  %v701_v1 = vmul.f32 %v2120_v6, %v2696_v57  ;;  %2141 = vpow2.f32 %v1660_v3  ;;  %v1581_v51 = vmul.f32 -1.442695, %v2829_v47 }
 0x15e   : > { %v2124_v62 = vpop.eup %2123  ;;  %1721 = vst.msk [vmem:[%s2444_s30 + $0xb8] sm:$0xf] %vm838_vm2, %v1789_v11  ;;  %v1787_v59 = vpack.c.bf16 %v1257_v56, %v1257_v56  ;;  %v1260_v24 = vmul.f32 %v2122_v42, %v2700_v54  ;;  %2143 = vpow2.f32 %v1582_v43 }
 0x15f   : > { %v2126_v35 = vpop.eup %2125  ;;  %859 = vst.msk [vmem:[%s2444_s30 + $0xa0] sm:$0xf] %vm838_vm2, %v1755_v20  ;;  %v1758_v2 = vpack.c.bf16 %v701_v1, %v701_v1  ;;  %v699_v57 = vmul.f32 %v2124_v62, %v2704_v60  ;;  %2145 = vpow2.f32 %v1665_v4 }
 0x160   : > { %v2128_v9 = vpop.eup %2127  ;;  %1719 = vst.msk [vmem:[%s2444_s30 + $0xa8] sm:$0xf] %vm838_vm2, %v1787_v59  ;;  %v1790_v55 = vpack.c.bf16 %v1260_v24, %v1260_v24  ;;  %v1258_v54 = vmul.f32 %v2126_v35, %v2711_v13  ;;  %2147 = vpow2.f32 %v1580_v58 }
 0x161   : > { %v2130_v21 = vpop.eup %2129  ;;  %862 = vst.msk [vmem:[%s2444_s30 + $0xb4] sm:$0xf] %vm838_vm2, %v1758_v2  ;;  %v1756_v17 = vpack.c.bf16 %v699_v57, %v699_v57  ;;  %v704_v60 = vmul.f32 %v2128_v9, %v2722_v18  ;;  %2149 = vpow2.f32 %v1663_v10 }
 0x162   : > { %v2132_v36 = vpop.eup %2131  ;;  %1722 = vst.msk [vmem:[%s2444_s30 + $0xbc] sm:$0xf] %vm838_vm2, %v1790_v55  ;;  %v1788_v28 = vpack.c.bf16 %v1258_v54, %v1258_v54  ;;  %v1263_v13 = vmul.f32 %v2130_v21, %v2731_v48  ;;  %2151 = vpow2.f32 %v1583_v38 }
 0x163   : > { %v2134_v34 = vpop.eup %2133  ;;  %860 = vst.msk [vmem:[%s2444_s30 + $0xa4] sm:$0xf] %vm838_vm2, %v1756_v17  ;;  %v1761_v40 = vpack.c.bf16 %v704_v60, %v704_v60  ;;  %v702_v15 = vmul.f32 %v2132_v36, %v2738_v27  ;;  %2153 = vpow2.f32 %v1666_v61 }
 0x164   : > { %v2136_v18 = vpop.eup %2135  ;;  %1720 = vst.msk [vmem:[%s2444_s30 + $0xac] sm:$0xf] %vm838_vm2, %v1788_v28  ;;  %v1793_v23 = vpack.c.bf16 %v1263_v13, %v1263_v13  ;;  %v1261_v29 = vmul.f32 %v2134_v34, %v2745_v49  ;;  %2155 = vpow2.f32 %v1581_v51 }
 0x165   : > { %v2138_v0 = vpop.eup %2137  ;;  %865 = vst.msk [vmem:[%s2444_s30 + $0xd0] sm:$0xf] %vm838_vm2, %v1761_v40  ;;  %v1759_v48 = vpack.c.bf16 %v702_v15, %v702_v15  ;;  %v609_v32 = vadd.f32 1.0, %v2136_v18  ;;  %2157 = vpow2.f32 %v1664_v7 }
 0x166   : > { %v2140_v3 = vpop.eup %2139  ;;  %1725 = vst.msk [vmem:[%s2444_s30 + $0xd8] sm:$0xf] %vm838_vm2, %v1793_v23  ;;  %v1791_v27 = vpack.c.bf16 %v1261_v29, %v1261_v29  ;;  %v1168_v22 = vadd.f32 1.0, %v2138_v0 }
 0x167   : > { %v2142_v45 = vpop.eup %2141  ;;  %863 = vst.msk [vmem:[%s2444_s30 + $0xc0] sm:$0xf] %vm838_vm2, %v1759_v48  ;;  %2159 = vrcp.f32 %v609_v32  ;;  %v607_v43 = vadd.f32 1.0, %v2140_v3 }
 0x168   : > { %v2144_v4 = vpop.eup %2143  ;;  %1723 = vst.msk [vmem:[%s2444_s30 + $0xc8] sm:$0xf] %vm838_vm2, %v1791_v27  ;;  %2161 = vrcp.f32 %v1168_v22  ;;  %v1166_v49 = vadd.f32 1.0, %v2142_v45 }
 0x169   : > { %v2146_v25 = vpop.eup %2145  ;;  %2163 = vrcp.f32 %v607_v43  ;;  %v612_v30 = vadd.f32 1.0, %v2144_v4 }
 0x16a   : > { %v2148_v58 = vpop.eup %2147  ;;  %2165 = vrcp.f32 %v1166_v49  ;;  %v1171_v10 = vadd.f32 1.0, %v2146_v25 }
 0x16b   : > { %v2150_v31 = vpop.eup %2149  ;;  %2167 = vrcp.f32 %v612_v30  ;;  %v610_v41 = vadd.f32 1.0, %v2148_v58 }
 0x16c   : > { %v2152_v37 = vpop.eup %2151  ;;  %2169 = vrcp.f32 %v1171_v10  ;;  %v1169_v33 = vadd.f32 1.0, %v2150_v31 }
 0x16d   : > { %v2154_v46 = vpop.eup %2153  ;;  %2171 = vrcp.f32 %v610_v41  ;;  %v613_v63 = vadd.f32 1.0, %v2152_v37 }
 0x16e   : > { %v2156_v44 = vpop.eup %2155  ;;  %2173 = vrcp.f32 %v1169_v33  ;;  %v1172_v6 = vadd.f32 1.0, %v2154_v46 }
 0x16f   : > { %v2158_v11 = vpop.eup %2157  ;;  %2175 = vrcp.f32 %v613_v63  ;;  %v611_v56 = vadd.f32 1.0, %v2156_v44 }
 0x170   : > { %2177 = vrcp.f32 %v1172_v6  ;;  %v1170_v42 = vadd.f32 1.0, %v2158_v11 }
 0x171   : > { %v2160_v20 = vpop.eup %2159  ;;  %2179 = vrcp.f32 %v611_v56 }
 0x172   : > { %v2162_v1 = vpop.eup %2161  ;;  %v705_v62 = vmul.f32 %v2160_v20, %v2781_v26  ;;  %2181 = vrcp.f32 %v1170_v42 }
 0x173   : > { %v2164_v59 = vpop.eup %2163  ;;  %v1264_v24 = vmul.f32 %v2162_v1, %v2787_v39 }
 0x174   : > { %v2166_v38 = vpop.eup %2165  ;;  %v1762_v35 = vpack.c.bf16 %v705_v62, %v705_v62  ;;  %v703_v2 = vmul.f32 %v2164_v59, %v2790_v52 }
 0x175   : > { %v2168_v57 = vpop.eup %2167  ;;  %v1794_v61 = vpack.c.bf16 %v1264_v24, %v1264_v24  ;;  %v1262_v9 = vmul.f32 %v2166_v38, %v2793_v8 }
 0x176   : > { %v2170_v55 = vpop.eup %2169  ;;  %866 = vst.msk [vmem:[%s2444_s30 + $0xd4] sm:$0xf] %vm838_vm2, %v1762_v35  ;;  %v1760_v54 = vpack.c.bf16 %v703_v2, %v703_v2  ;;  %v708_v26 = vmul.f32 %v2168_v57, %v2796_v53 }
 0x177   : > { %v2172_v51 = vpop.eup %2171  ;;  %1726 = vst.msk [vmem:[%s2444_s30 + $0xdc] sm:$0xf] %vm838_vm2, %v1794_v61  ;;  %v1792_v39 = vpack.c.bf16 %v1262_v9, %v1262_v9  ;;  %v1267_v21 = vmul.f32 %v2170_v55, %v2799_v50 }
 0x178   : > { %v2174_v52 = vpop.eup %2173  ;;  %864 = vst.msk [vmem:[%s2444_s30 + $0xc4] sm:$0xf] %vm838_vm2, %v1760_v54  ;;  %v1765_v17 = vpack.c.bf16 %v708_v26, %v708_v26  ;;  %v706_v8 = vmul.f32 %v2172_v51, %v2802_v12 }
 0x179   : > { %v2176_v60 = vpop.eup %2175  ;;  %1724 = vst.msk [vmem:[%s2444_s30 + $0xcc] sm:$0xf] %vm838_vm2, %v1792_v39  ;;  %v1797_v7 = vpack.c.bf16 %v1267_v21, %v1267_v21  ;;  %v1265_v53 = vmul.f32 %v2174_v52, %v2805_v14 }
 0x17a   : > { %v2178_v36 = vpop.eup %2177  ;;  %869 = vst.msk [vmem:[%s2444_s30 + $0xf0] sm:$0xf] %vm838_vm2, %v1765_v17  ;;  %v1763_v50 = vpack.c.bf16 %v706_v8, %v706_v8  ;;  %v709_v28 = vmul.f32 %v2176_v60, %v2819_v16 }
 0x17b   : > { %v2180_v13 = vpop.eup %2179  ;;  %1729 = vst.msk [vmem:[%s2444_s30 + $0xf8] sm:$0xf] %vm838_vm2, %v1797_v7  ;;  %v1795_v12 = vpack.c.bf16 %v1265_v53, %v1265_v53  ;;  %v1268_v34 = vmul.f32 %v2178_v36, %v2823_v19 }
 0x17c   : > { %v2182_v40 = vpop.eup %2181  ;;  %867 = vst.msk [vmem:[%s2444_s30 + $0xe0] sm:$0xf] %vm838_vm2, %v1763_v50  ;;  %v1766_v14 = vpack.c.bf16 %v709_v28, %v709_v28  ;;  %v707_v15 = vmul.f32 %v2180_v13, %v2829_v47 }
 0x17d   : > { %1727 = vst.msk [vmem:[%s2444_s30 + $0xe8] sm:$0xf] %vm838_vm2, %v1795_v12  ;;  %v1798_v18 = vpack.c.bf16 %v1268_v34, %v1268_v34  ;;  %v1266_v23 = vmul.f32 %v2182_v40, %v2835_v5 }
 0x17e   : > { %870 = vst.msk [vmem:[%s2444_s30 + $0xf4] sm:$0xf] %vm838_vm2, %v1766_v14  ;;  %v1764_v16 = vpack.c.bf16 %v707_v15, %v707_v15 }
 0x17f   : > { %1730 = vst.msk [vmem:[%s2444_s30 + $0xfc] sm:$0xf] %vm838_vm2, %v1798_v18  ;;  %v1796_v29 = vpack.c.bf16 %v1266_v23, %v1266_v23 }
 0x180   : > { %868 = vst.msk [vmem:[%s2444_s30 + $0xe4] sm:$0xf] %vm838_vm2, %v1764_v16 }
 0x181   : > { %1728 = vst.msk [vmem:[%s2444_s30 + $0xec] sm:$0xf] %vm838_vm2, %v1796_v29 }
 0x182 PF: > { %s13_s14 = sadd.s32 1, %s2207_s14   ;;  %s2927_s12 = smov %s2203_s13 }
 0x183   : > { %p10_p5 = scmp.ge.s32.totalorder %s13_s14, 4   ;;  %s2928_s13 = smov %s2930_s15 }
 0x185   :  { %12 = sbr.rel (!%p10_p5) target bundleno = 2 (0x2), region = 65 }

</bundles_post_ra>
